<compile_context>
chip_gen: v6e
topology: v6e:2x2x1
jax: 0.10.0
libtpu: 0.0.40
codegen_flags: <defaults>
</compile_context>

<pallas_src>
import functools

import jax
import jax.numpy as jnp
from jax.experimental import pallas as pl
from jax.experimental.pallas import tpu as pltpu

LANES = 128
STRIP_ROWS = 64   # rows per fori_loop strip: 8 f32 vregs per operand -> stays in vregs


def _tpu_config():
    """Best-effort (tensorcores_per_chip, max_tile_rows) for the local chip."""
    n_cores = 1
    vmem_bytes = 64 << 20
    try:
        info = pltpu.get_tpu_info()
        v = getattr(info, "vmem_capacity_bytes", None)
        if isinstance(v, int) and v > 0:
            vmem_bytes = v
        for attr in ("num_tensorcores", "tensorcores_per_chip",
                     "tensor_cores_per_chip", "num_cores_per_chip"):
            c = getattr(info, attr, None)
            if isinstance(c, int) and c >= 1:
                n_cores = min(int(c), 2)
                break
    except Exception:
        pass
    # 4 MiB f32 input blocks on <=64 MiB-VMEM chips (v7x), 8 MiB on 128 MiB
    # chips (v5e/v6e); double-buffered inputs stay well inside physical VMEM.
    max_tile_rows = 16384 if vmem_bytes >= (96 << 20) else 8192
    return n_cores, max_tile_rows


def _dice_sums_kernel(rows_ref, l_ref, t_ref, o_ref, *,
                      tile_rows, steps_per_core, unroll):
    """Per-core (8,128) partial sums of iflat*tflat and iflat+tflat."""
    c = pl.program_id(0)      # core axis (CORE_PARALLEL on multi-TC chips)
    i = pl.program_id(1)      # reduction axis ("arbitrary")

    @pl.when(i == 0)
    def _():
        o_ref[...] = jnp.zeros_like(o_ref)

    total_rows = rows_ref[0]                 # number of fully-valid 128-lane rows
    blk = c * steps_per_core + i             # intended (UNCLAMPED) block index
    row0 = blk * tile_rows                   # row-level index: safe to 2^31 rows
    n_strips = tile_rows // STRIP_ROWS
    fold = STRIP_ROWS // 8

    def strip_body(masked):
        def body(j, carry):
            acc_p, acc_s = carry
            r = pl.multiple_of(j * STRIP_ROWS, STRIP_ROWS)
            l = l_ref[pl.ds(r, STRIP_ROWS), :].astype(jnp.float32)
            t = t_ref[pl.ds(r, STRIP_ROWS), :].astype(jnp.float32)
            # 1 - sigmoid(x) == sigmoid(-x) == 0.5 - 0.5*tanh(x/2):
            # one EUP push + two VPU ops per element.
            iflat = 0.5 - 0.5 * jnp.tanh(0.5 * l)
            tflat = 1.0 - t
            if masked:
                # Row-level validity; where-select (not mask-multiply) so
                # NaN/Inf garbage in partial/duplicate blocks cannot propagate.
                rid = jax.lax.broadcasted_iota(jnp.int32, (STRIP_ROWS, LANES), 0)
                valid = (row0 + r + rid) < total_rows
                iflat = jnp.where(valid, iflat, 0.0)
                tflat = jnp.where(valid, tflat, 0.0)
            acc_p = acc_p + (iflat * tflat).reshape(fold, 8, LANES).sum(axis=0)
            acc_s = acc_s + (iflat + tflat).reshape(fold, 8, LANES).sum(axis=0)
            return acc_p, acc_s
        return body

    def run(masked):
        zero = jnp.zeros((8, LANES), jnp.float32)
        acc_p, acc_s = jax.lax.fori_loop(
            0, n_strips, strip_body(masked), (zero, zero), unroll=unroll)
        o_ref[0, 0] += acc_p
        o_ref[0, 1] += acc_s

    # Interior blocks: unmasked fast path (no iota / compare / select).
    # Only the final partial block per core and clamped-duplicate blocks take
    # the masked path; the mask uses the *unclamped* blk, so duplicate blocks
    # contribute exactly zero.
    fully_valid = (row0 + tile_rows) <= total_rows

    @pl.when(fully_valid)
    def _():
        run(masked=False)

    @pl.when(jnp.logical_not(fully_valid))
    def _():
        run(masked=True)


def _partial_sums(l2, t2, rows, n_cores, max_tile_rows):
    """pallas_call over the aligned (rows, 128) prefix -> (n_cores, 2, 8, 128)."""
    tile_rows = min(max_tile_rows,
                    ((rows + STRIP_ROWS - 1) // STRIP_ROWS) * STRIP_ROWS)
    nblocks = pl.cdiv(rows, tile_rows)
    steps_per_core = pl.cdiv(nblocks, n_cores)
    last_blk = nblocks - 1
    n_strips = tile_rows // STRIP_ROWS
    unroll = min(4, n_strips)

    def in_map(c, i, rows_ref):
        # Clamp so out-of-range block indices (odd split / duplicate core
        # blocks) re-read the last valid block; the kernel masks them out
        # using the unclamped index.
        return (jnp.minimum(c * steps_per_core + i, last_blk), 0)

    kernel = functools.partial(_dice_sums_kernel, tile_rows=tile_rows,
                               steps_per_core=steps_per_core, unroll=unroll)

    # Explicit VMEM budget: double-buffered input blocks + generous slack.
    in_block_bytes = tile_rows * LANES * (l2.dtype.itemsize + t2.dtype.itemsize)
    vmem_limit = int(2 * in_block_bytes + (16 << 20))

    if n_cores > 1:
        dim_sem = (getattr(pltpu, "CORE_PARALLEL", "parallel"),
                   getattr(pltpu, "ARBITRARY", "arbitrary"))
    else:
        dim_sem = ("arbitrary", "arbitrary")

    rows_arr = jnp.array([rows], dtype=jnp.int32)
    total_bytes = int(l2.size * l2.dtype.itemsize + t2.size * t2.dtype.itemsize)

    return pl.pallas_call(
        kernel,
        out_shape=jax.ShapeDtypeStruct((n_cores, 2, 8, LANES), jnp.float32),
        grid_spec=pltpu.PrefetchScalarGridSpec(
            num_scalar_prefetch=1,
            grid=(n_cores, steps_per_core),
            in_specs=[
                pl.BlockSpec((tile_rows, LANES), in_map),
                pl.BlockSpec((tile_rows, LANES), in_map),
            ],
            # One resident accumulator slab per core (written back at the end).
            out_specs=pl.BlockSpec((1, 2, 8, LANES),
                                   lambda c, i, rows_ref: (c, 0, 0, 0)),
        ),
        compiler_params=pltpu.CompilerParams(
            dimension_semantics=dim_sem,
            vmem_limit_bytes=vmem_limit),
        cost_estimate=pl.CostEstimate(
            flops=8 * rows * LANES, transcendentals=rows * LANES,
            bytes_accessed=total_bytes),
    )(rows_arr, l2, t2)


def soft_inv_dice_loss(logits, targets):
    """Pallas implementation of SoftInvDiceLoss.forward (returns an f32 scalar)."""
    smooth = jnp.float32(1.0)
    n_cores, max_tile_rows = _tpu_config()

    lf = logits.reshape(-1)     # free metadata flatten for contiguous inputs
    tf = targets.reshape(-1)
    n = lf.shape[0]
    rows = n // LANES
    n_main = rows * LANES

    # Ragged (<128 element) tail folded in a tiny JAX epilogue instead of an
    # O(n) pad copy of the whole tensor.  (XLA may still materialize the
    # aligned-prefix slice; guaranteeing numel % 128 == 0 upstream keeps the
    # pipeline fully copy-free.)
    inter_tail = jnp.float32(0.0)
    sum_tail = jnp.float32(0.0)
    if n_main != n:
        l_tail = jax.lax.slice(lf, (n_main,), (n,)).astype(jnp.float32)
        t_tail = jax.lax.slice(tf, (n_main,), (n,)).astype(jnp.float32)
        i_tail = 0.5 - 0.5 * jnp.tanh(0.5 * l_tail)
        tf_tail = 1.0 - t_tail
        inter_tail = jnp.sum(i_tail * tf_tail)
        sum_tail = jnp.sum(i_tail + tf_tail)

    if rows == 0:
        intersection = inter_tail
        denom_sum = sum_tail
    else:
        if n_main == n:
            l2 = lf.reshape(rows, LANES)          # zero-copy reshape
            t2 = tf.reshape(rows, LANES)
        else:
            l2 = jax.lax.slice(lf, (0,), (n_main,)).reshape(rows, LANES)
            t2 = jax.lax.slice(tf, (0,), (n_main,)).reshape(rows, LANES)
        part = _partial_sums(l2, t2, rows, n_cores, max_tile_rows)
        sums = part.sum(axis=(0, 2, 3))           # (2,) tiny epilogue reduce
        intersection = sums[0] + inter_tail
        denom_sum = sums[1] + sum_tail

    return 1.0 - (2.0 * intersection + smooth) / (denom_sum + smooth)


def _reference(logits, targets):
    smooth = 1.0
    p = jax.nn.sigmoid(logits.astype(jnp.float32)).reshape(-1)
    iflat = 1.0 - p
    tflat = 1.0 - targets.astype(jnp.float32).reshape(-1)
    inter = jnp.sum(iflat * tflat)
    return 1.0 - (2.0 * inter + smooth) / (jnp.sum(iflat) + jnp.sum(tflat) + smooth)


if __name__ == "__main__":
    key = jax.random.PRNGKey(0)
    k1, k2, k3, k4, k5, k6 = jax.random.split(key, 6)

    # NCHW, matching the PyTorch convention (numel % 128 == 0: zero-copy path).
    logits = jax.random.normal(k1, (2, 4, 16, 16), dtype=jnp.float32)
    targets = (jax.random.uniform(k2, (2, 4, 16, 16)) > 0.5).astype(jnp.float32)
    loss = soft_inv_dice_loss(logits, targets)
    jax.block_until_ready(loss)
    ref = _reference(logits, targets)
    assert jnp.allclose(loss, ref, atol=1e-5, rtol=1e-5), (loss, ref)

    # Non-128-aligned numel: exercises the JAX-epilogue ragged tail and the
    # in-kernel row-masked (slow) path.
    logits2 = jax.random.normal(k3, (2, 3, 15, 17), dtype=jnp.float32)
    targets2 = (jax.random.uniform(k4, (2, 3, 15, 17)) > 0.5).astype(jnp.float32)
    loss2 = soft_inv_dice_loss(logits2, targets2)
    jax.block_until_ready(loss2)
    ref2 = _reference(logits2, targets2)
    assert jnp.allclose(loss2, ref2, atol=1e-5, rtol=1e-5), (loss2, ref2)

    # Larger input: exercises the unmasked fast path, multi-step accumulation
    # across the reduction grid axis, and a partial final block.
    logits3 = jax.random.normal(k5, (8, 4, 260, 256), dtype=jnp.float32)
    targets3 = (jax.random.uniform(k6, (8, 4, 260, 256)) > 0.5).astype(jnp.float32)
    loss3 = soft_inv_dice_loss(logits3, targets3)
    jax.block_until_ready(loss3)
    ref3 = _reference(logits3, targets3)
    assert jnp.allclose(loss3, ref3, atol=1e-4, rtol=1e-4), (loss3, ref3)

    print("KERNEL_OK")
</pallas_src>

<mosaic_0001>
module attributes {stable_mosaic.version = 11 : i64} {
  func.func @_dice_sums_kernel(%arg0: i32, %arg1: i32, %arg2: memref<1xi32, #tpu.memory_space<smem>>, %arg3: memref<64x128xf32, #tpu.memory_space<vmem>>, %arg4: memref<64x128xf32, #tpu.memory_space<vmem>>, %arg5: memref<1x2x8x128xf32, #tpu.memory_space<vmem>>) attributes {dimension_semantics = [#tpu.dimension_semantics<arbitrary>, #tpu.dimension_semantics<arbitrary>], iteration_bounds = array<i64: 1, 1>, scalar_prefetch = 1 : i64, scratch_operands = 0 : i64, tpu.core_type = #tpu.core_type<tc>, window_params = [{transform_indices = @transform_0, window_bounds = array<i64: 64, 128>}, {transform_indices = @transform_1, window_bounds = array<i64: 64, 128>}, {transform_indices = @transform_2, window_bounds = array<i64: 1, 2, 8, 128>}]} {
    %c0_i32 = arith.constant 0 : i32
    %0 = arith.cmpi eq, %arg1, %c0_i32 : i32
    %1 = arith.extui %0 : i1 to i32
    %c0_i32_0 = arith.constant 0 : i32
    %2 = arith.cmpi ne, %1, %c0_i32_0 : i32
    scf.if %2 {
      %cst = arith.constant 0.000000e+00 : f32
      %14 = vector.broadcast %cst : f32 to vector<1x2x8x128xf32>
      %c0_4 = arith.constant 0 : index
      %c0_5 = arith.constant 0 : index
      %c0_6 = arith.constant 0 : index
      %c0_7 = arith.constant 0 : index
      %15 = vector.load %arg5[%c0_4, %c0_5, %c0_6, %c0_7] : memref<1x2x8x128xf32, #tpu.memory_space<vmem>>, vector<1x2x8x128xf32>
      tpu.vector_store %arg5[%c0_4, %c0_5, %c0_6, %c0_7], %14 {strides = array<i32>} : memref<1x2x8x128xf32, #tpu.memory_space<vmem>>, vector<1x2x8x128xf32>,
    } else {
    }
    %c0 = arith.constant 0 : index
    %3 = memref.load %arg2[%c0] : memref<1xi32, #tpu.memory_space<smem>>
    %c1_i32 = arith.constant 1 : i32
    %4 = arith.muli %arg0, %c1_i32 : i32
    %5 = arith.addi %4, %arg1 : i32
    %c64_i32 = arith.constant 64 : i32
    %6 = arith.muli %5, %c64_i32 : i32
    %c64_i32_1 = arith.constant 64 : i32
    %7 = arith.addi %6, %c64_i32_1 : i32
    %8 = arith.cmpi sle, %7, %3 : i32
    %9 = arith.extui %8 : i1 to i32
    %c0_i32_2 = arith.constant 0 : i32
    %10 = arith.cmpi ne, %9, %c0_i32_2 : i32
    scf.if %10 {
      %cst = arith.constant 0.000000e+00 : f32
      %14 = vector.broadcast %cst : f32 to vector<8x128xf32>
      %c0_i32_4 = arith.constant 0 : i32
      %c64_i32_5 = arith.constant 64 : i32
      %15 = arith.muli %c0_i32_4, %c64_i32_5 : i32
      %16 = tpu.assume_multiple %15, 64 : i32
      %17 = arith.index_cast %16 : i32 to index
      %c0_6 = arith.constant 0 : index
      %18 = vector.load %arg3[%17, %c0_6] : memref<64x128xf32, #tpu.memory_space<vmem>>, vector<64x128xf32>
      %19 = arith.index_cast %16 : i32 to index
      %c0_7 = arith.constant 0 : index
      %20 = vector.load %arg4[%19, %c0_7] : memref<64x128xf32, #tpu.memory_space<vmem>>, vector<64x128xf32>
      %cst_8 = arith.constant 5.000000e-01 : f32
      %21 = vector.broadcast %cst_8 : f32 to vector<64x128xf32>
      %22 = arith.mulf %21, %18 : vector<64x128xf32>
      %23 = math.tanh %22 : vector<64x128xf32>
      %cst_9 = arith.constant 5.000000e-01 : f32
      %24 = vector.broadcast %cst_9 : f32 to vector<64x128xf32>
      %25 = arith.mulf %24, %23 : vector<64x128xf32>
      %cst_10 = arith.constant 5.000000e-01 : f32
      %26 = vector.broadcast %cst_10 : f32 to vector<64x128xf32>
      %27 = arith.subf %26, %25 : vector<64x128xf32>
      %cst_11 = arith.constant 1.000000e+00 : f32
      %28 = vector.broadcast %cst_11 : f32 to vector<64x128xf32>
      %29 = arith.subf %28, %20 : vector<64x128xf32>
      %30 = arith.mulf %27, %29 : vector<64x128xf32>
      %31 = vector.shape_cast %30 : vector<64x128xf32> to vector<8x8x128xf32>
      %cst_12 = arith.constant dense<0.000000e+00> : vector<8x128xf32>
      %32 = vector.multi_reduction <add>, %31, %cst_12 [0] : vector<8x8x128xf32> to vector<8x128xf32>
      %33 = arith.addf %14, %32 : vector<8x128xf32>
      %34 = arith.addf %27, %29 : vector<64x128xf32>
      %35 = vector.shape_cast %34 : vector<64x128xf32> to vector<8x8x128xf32>
      %cst_13 = arith.constant dense<0.000000e+00> : vector<8x128xf32>
      %36 = vector.multi_reduction <add>, %35, %cst_13 [0] : vector<8x8x128xf32> to vector<8x128xf32>
      %37 = arith.addf %14, %36 : vector<8x128xf32>
      %c1_i32_14 = arith.constant 1 : i32
      %c0_15 = arith.constant 0 : index
      %c0_16 = arith.constant 0 : index
      %c0_17 = arith.constant 0 : index
      %c0_18 = arith.constant 0 : index
      %38 = vector.load %arg5[%c0_15, %c0_16, %c0_17, %c0_18] : memref<1x2x8x128xf32, #tpu.memory_space<vmem>>, vector<1x1x8x128xf32>
      %39 = vector.shape_cast %38 : vector<1x1x8x128xf32> to vector<8x128xf32>
      %40 = arith.addf %39, %33 : vector<8x128xf32>
      %c0_19 = arith.constant 0 : index
      %c0_20 = arith.constant 0 : index
      %c0_21 = arith.constant 0 : index
      %c0_22 = arith.constant 0 : index
      %41 = vector.load %arg5[%c0_19, %c0_20, %c0_21, %c0_22] : memref<1x2x8x128xf32, #tpu.memory_space<vmem>>, vector<1x1x8x128xf32>
      %42 = vector.shape_cast %41 : vector<1x1x8x128xf32> to vector<8x128xf32>
      %43 = vector.shape_cast %40 : vector<8x128xf32> to vector<1x1x8x128xf32>
      tpu.vector_store %arg5[%c0_19, %c0_20, %c0_21, %c0_22], %43 {strides = array<i32>} : memref<1x2x8x128xf32, #tpu.memory_space<vmem>>, vector<1x1x8x128xf32>,
      %c0_23 = arith.constant 0 : index
      %c1 = arith.constant 1 : index
      %c0_24 = arith.constant 0 : index
      %c0_25 = arith.constant 0 : index
      %44 = vector.load %arg5[%c0_23, %c1, %c0_24, %c0_25] : memref<1x2x8x128xf32, #tpu.memory_space<vmem>>, vector<1x1x8x128xf32>
      %45 = vector.shape_cast %44 : vector<1x1x8x128xf32> to vector<8x128xf32>
      %46 = arith.addf %45, %37 : vector<8x128xf32>
      %c0_26 = arith.constant 0 : index
      %c1_27 = arith.constant 1 : index
      %c0_28 = arith.constant 0 : index
      %c0_29 = arith.constant 0 : index
      %47 = vector.load %arg5[%c0_26, %c1_27, %c0_28, %c0_29] : memref<1x2x8x128xf32, #tpu.memory_space<vmem>>, vector<1x1x8x128xf32>
      %48 = vector.shape_cast %47 : vector<1x1x8x128xf32> to vector<8x128xf32>
      %49 = vector.shape_cast %46 : vector<8x128xf32> to vector<1x1x8x128xf32>
      tpu.vector_store %arg5[%c0_26, %c1_27, %c0_28, %c0_29], %49 {strides = array<i32>} : memref<1x2x8x128xf32, #tpu.memory_space<vmem>>, vector<1x1x8x128xf32>,
    } else {
    }
    %true = arith.constant true
    %11 = arith.xori %8, %true : i1
    %12 = arith.extui %11 : i1 to i32
    %c0_i32_3 = arith.constant 0 : i32
    %13 = arith.cmpi ne, %12, %c0_i32_3 : i32
    scf.if %13 {
      %cst = arith.constant 0.000000e+00 : f32
      %14 = vector.broadcast %cst : f32 to vector<8x128xf32>
      %c0_i32_4 = arith.constant 0 : i32
      %c64_i32_5 = arith.constant 64 : i32
      %15 = arith.muli %c0_i32_4, %c64_i32_5 : i32
      %16 = tpu.assume_multiple %15, 64 : i32
      %17 = arith.index_cast %16 : i32 to index
      %c0_6 = arith.constant 0 : index
      %18 = vector.load %arg3[%17, %c0_6] : memref<64x128xf32, #tpu.memory_space<vmem>>, vector<64x128xf32>
      %19 = arith.index_cast %16 : i32 to index
      %c0_7 = arith.constant 0 : index
      %20 = vector.load %arg4[%19, %c0_7] : memref<64x128xf32, #tpu.memory_space<vmem>>, vector<64x128xf32>
      %cst_8 = arith.constant 5.000000e-01 : f32
      %21 = vector.broadcast %cst_8 : f32 to vector<64x128xf32>
      %22 = arith.mulf %21, %18 : vector<64x128xf32>
      %23 = math.tanh %22 : vector<64x128xf32>
      %cst_9 = arith.constant 5.000000e-01 : f32
      %24 = vector.broadcast %cst_9 : f32 to vector<64x128xf32>
      %25 = arith.mulf %24, %23 : vector<64x128xf32>
      %cst_10 = arith.constant 5.000000e-01 : f32
      %26 = vector.broadcast %cst_10 : f32 to vector<64x128xf32>
      %27 = arith.subf %26, %25 : vector<64x128xf32>
      %cst_11 = arith.constant 1.000000e+00 : f32
      %28 = vector.broadcast %cst_11 : f32 to vector<64x128xf32>
      %29 = arith.subf %28, %20 : vector<64x128xf32>
      %30 = tpu.iota {dimensions = array<i32: 0>} : vector<64x128xi32>
      %31 = arith.addi %6, %16 : i32
      %32 = vector.broadcast %31 : i32 to vector<64x128xi32>
      %33 = arith.addi %32, %30 : vector<64x128xi32>
      %34 = vector.broadcast %3 : i32 to vector<64x128xi32>
      %35 = arith.cmpi slt, %33, %34 : vector<64x128xi32>
      %cst_12 = arith.constant 0.000000e+00 : f32
      %36 = vector.broadcast %cst_12 : f32 to vector<64x128xf32>
      %37 = arith.select %35, %27, %36 : vector<64x128xi1>, vector<64x128xf32>
      %cst_13 = arith.constant 0.000000e+00 : f32
      %38 = vector.broadcast %cst_13 : f32 to vector<64x128xf32>
      %39 = arith.select %35, %29, %38 : vector<64x128xi1>, vector<64x128xf32>
      %40 = arith.mulf %37, %39 : vector<64x128xf32>
      %41 = vector.shape_cast %40 : vector<64x128xf32> to vector<8x8x128xf32>
      %cst_14 = arith.constant dense<0.000000e+00> : vector<8x128xf32>
      %42 = vector.multi_reduction <add>, %41, %cst_14 [0] : vector<8x8x128xf32> to vector<8x128xf32>
      %43 = arith.addf %14, %42 : vector<8x128xf32>
      %44 = arith.addf %37, %39 : vector<64x128xf32>
      %45 = vector.shape_cast %44 : vector<64x128xf32> to vector<8x8x128xf32>
      %cst_15 = arith.constant dense<0.000000e+00> : vector<8x128xf32>
      %46 = vector.multi_reduction <add>, %45, %cst_15 [0] : vector<8x8x128xf32> to vector<8x128xf32>
      %47 = arith.addf %14, %46 : vector<8x128xf32>
      %c1_i32_16 = arith.constant 1 : i32
      %c0_17 = arith.constant 0 : index
      %c0_18 = arith.constant 0 : index
      %c0_19 = arith.constant 0 : index
      %c0_20 = arith.constant 0 : index
      %48 = vector.load %arg5[%c0_17, %c0_18, %c0_19, %c0_20] : memref<1x2x8x128xf32, #tpu.memory_space<vmem>>, vector<1x1x8x128xf32>
      %49 = vector.shape_cast %48 : vector<1x1x8x128xf32> to vector<8x128xf32>
      %50 = arith.addf %49, %43 : vector<8x128xf32>
      %c0_21 = arith.constant 0 : index
      %c0_22 = arith.constant 0 : index
      %c0_23 = arith.constant 0 : index
      %c0_24 = arith.constant 0 : index
      %51 = vector.load %arg5[%c0_21, %c0_22, %c0_23, %c0_24] : memref<1x2x8x128xf32, #tpu.memory_space<vmem>>, vector<1x1x8x128xf32>
      %52 = vector.shape_cast %51 : vector<1x1x8x128xf32> to vector<8x128xf32>
      %53 = vector.shape_cast %50 : vector<8x128xf32> to vector<1x1x8x128xf32>
      tpu.vector_store %arg5[%c0_21, %c0_22, %c0_23, %c0_24], %53 {strides = array<i32>} : memref<1x2x8x128xf32, #tpu.memory_space<vmem>>, vector<1x1x8x128xf32>,
      %c0_25 = arith.constant 0 : index
      %c1 = arith.constant 1 : index
      %c0_26 = arith.constant 0 : index
      %c0_27 = arith.constant 0 : index
      %54 = vector.load %arg5[%c0_25, %c1, %c0_26, %c0_27] : memref<1x2x8x128xf32, #tpu.memory_space<vmem>>, vector<1x1x8x128xf32>
      %55 = vector.shape_cast %54 : vector<1x1x8x128xf32> to vector<8x128xf32>
      %56 = arith.addf %55, %47 : vector<8x128xf32>
      %c0_28 = arith.constant 0 : index
      %c1_29 = arith.constant 1 : index
      %c0_30 = arith.constant 0 : index
      %c0_31 = arith.constant 0 : index
      %57 = vector.load %arg5[%c0_28, %c1_29, %c0_30, %c0_31] : memref<1x2x8x128xf32, #tpu.memory_space<vmem>>, vector<1x1x8x128xf32>
      %58 = vector.shape_cast %57 : vector<1x1x8x128xf32> to vector<8x128xf32>
      %59 = vector.shape_cast %56 : vector<8x128xf32> to vector<1x1x8x128xf32>
      tpu.vector_store %arg5[%c0_28, %c1_29, %c0_30, %c0_31], %59 {strides = array<i32>} : memref<1x2x8x128xf32, #tpu.memory_space<vmem>>, vector<1x1x8x128xf32>,
    } else {
    }
    return
  }
  func.func @transform_0(%arg0: i32, %arg1: i32, %arg2: memref<1xi32, #tpu.memory_space<smem>>) -> (i32, i32) {
    %c1_i32 = arith.constant 1 : i32
    %0 = arith.muli %arg0, %c1_i32 : i32
    %1 = arith.addi %0, %arg1 : i32
    %c0_i32 = arith.constant 0 : i32
    %2 = arith.minsi %1, %c0_i32 : i32
    %c0_i32_0 = arith.constant 0 : i32
    %c0_i32_1 = arith.constant 0 : i32
    return %2, %c0_i32_0 : i32, i32
  }
  func.func @transform_1(%arg0: i32, %arg1: i32, %arg2: memref<1xi32, #tpu.memory_space<smem>>) -> (i32, i32) {
    %c1_i32 = arith.constant 1 : i32
    %0 = arith.muli %arg0, %c1_i32 : i32
    %1 = arith.addi %0, %arg1 : i32
    %c0_i32 = arith.constant 0 : i32
    %2 = arith.minsi %1, %c0_i32 : i32
    %c0_i32_0 = arith.constant 0 : i32
    %c0_i32_1 = arith.constant 0 : i32
    return %2, %c0_i32_0 : i32, i32
  }
  func.func @transform_2(%arg0: i32, %arg1: i32, %arg2: memref<1xi32, #tpu.memory_space<smem>>) -> (i32, i32, i32, i32) {
    %c0_i32 = arith.constant 0 : i32
    %c0_i32_0 = arith.constant 0 : i32
    %c0_i32_1 = arith.constant 0 : i32
    %c0_i32_2 = arith.constant 0 : i32
    return %arg0, %c0_i32, %c0_i32_0, %c0_i32_1 : i32, i32, i32, i32
  }
}

</mosaic_0001>

<bundles_post_ra>
// kernel: tpu_custom_call.1
= control target key start
LH: loop header
LB: loop body
LE: loop exit
PB: predicated region body
PF: predicated region fallthrough
CT: control target
= control target key end

     0   :  { %9 = vsyncpa [#allocation5], 0  ;;  %s561_s0 = inlined_call_operand.<no memory space> [shape: s32[1], index: 0, kind: input, shape index: {}]   ;;  %s562_s1 = inlined_call_operand.hbm [shape: f32[16,128], index: 1, kind: input, shape index: {}]   ;;  %s563_s2 = inlined_call_operand.hbm [shape: f32[16,128], index: 2, kind: input, shape index: {}]   ;;  %s564_s3 = inlined_call_operand.hbm [shape: f32[1,2,8,128], index: 3, kind: output, shape index: {}]  }
   0x1   :  { %10 = vsyncpa [#allocation8], 0 }
   0x2   :  { %11 = vsyncpa [#allocation6], 0 }
   0x3   :  { %22 = vsyncadd [#allocation5], 768  ;;  %s456_s12 = smov [#allocation4]  }
   0x4   :  { %s27_s13 = sshll.u32 %s456_s12, 4  ;;  %s28_s13 = int_to_ptr.vmem [resolvable:$true] %s27_s13 }
   0x5   :  { %s398_s14 = scalar_lea.vmem %s28_s13, 256  ;;  %s402_s15 = scalar_lea.vmem %s28_s13, 1024 }
   0x6   :  { %p399_p0 = scmp.ne.s32.totalorder %s28_s13, %s398_s14  ;;  %p403_p1 = scmp.lt.s32.totalorder %s28_s13, %s28_s13 }
   0x7   :  { %p404_p2 = scmp.lt.s32.totalorder %s402_s15, %s398_s14 }
   0x9   :  { %p405_p3 = por %p404_p2, %p403_p1 }
   0xb   :  { %p406_p4 = pnand %p405_p3, %p399_p0 }
   0xd   :  { %409 = shalt.err (!%p406_p4)
}
   0xe   :  { %s457_s16 = smov 128   ;;  %s458_s17 = smov 8  }
   0xf   :  { %33 = dma.hbm_to_vmem [thread:$0]  %s562_s1, 256, %s28_s13, [#allocation5], %s457_s16, %s457_s16, %s458_s17  }
  0x10   :  { %44 = vsyncadd [#allocation8], 768  ;;  %s459_s20 = smov [#allocation7]  }
  0x11   :  { %s49_s21 = sshll.u32 %s459_s20, 4  ;;  %s50_s21 = int_to_ptr.vmem [resolvable:$true] %s49_s21 }
  0x12   :  { %s418_s22 = scalar_lea.vmem %s50_s21, 256  ;;  %s422_s23 = scalar_lea.vmem %s50_s21, 1024 }
  0x13   :  { %p419_p5 = scmp.ne.s32.totalorder %s50_s21, %s418_s22  ;;  %p423_p6 = scmp.lt.s32.totalorder %s50_s21, %s50_s21 }
  0x14   :  { %p424_p7 = scmp.lt.s32.totalorder %s422_s23, %s418_s22 }
  0x16   :  { %p425_p8 = por %p424_p7, %p423_p6 }
  0x18   :  { %p426_p9 = pnand %p425_p8, %p419_p5 }
  0x1a   :  { %429 = shalt.err (!%p426_p9)
}
  0x1b   :  { %55 = dma.hbm_to_vmem [thread:$0]  %s563_s2, 256, %s50_s21, [#allocation8], %s457_s16, %s457_s16, %s458_s17  }
  0x1c   :  { %450 = dma.done.wait [#allocation5], 1024  }
  0x1d   :  { %451 = vsyncadd [#allocation5], 4294966272 }
  0x1e   :  { %452 = dma.done.wait [#allocation8], 1024  }
  0x1f   :  { %453 = vsyncadd [#allocation8], 4294966272  ;;  %v460_v0 = vmov 0.0   ;;  %p349_p10 = scmp.lt.s32.totalorder %s561_s0, 64 }
  0x20   :  { %78 = vst [vmem:[#allocation9] sm:$0xff] %v460_v0  ;;  %79 = vst [vmem:[#allocation9 + $0x8] sm:$0xff] %v460_v0 }
  0x21   :  { %87 = sbr.rel (%p349_p10) target bundleno = 80 (0x50), region = 25 }
  0x26   :  { %v88_v1 = vld [vmem:[#allocation4] sm:$0xff]  ;;  %v89_v2 = vld [vmem:[#allocation4 + $0x8] sm:$0xff]  ;;  %v90_v3 = vld [vmem:[#allocation4 + $0x10] sm:$0xff] }
  0x27   :  { %v91_v4 = vld [vmem:[#allocation4 + $0x18] sm:$0xff]  ;;  %v92_v5 = vld [vmem:[#allocation4 + $0x20] sm:$0xff]  ;;  %v93_v6 = vld [vmem:[#allocation4 + $0x28] sm:$0xff]  ;;  %v104_v7 = vmul.f32 0.5, %v88_v1  ;;  %v105_v8 = vmul.f32 0.5, %v89_v2  ;;  %v106_v9 = vmul.f32 0.5, %v90_v3 }
  0x28   :  { %v94_v10 = vld [vmem:[#allocation4 + $0x30] sm:$0xff]  ;;  %v107_v11 = vmul.f32 0.5, %v91_v4  ;;  %v95_v12 = vld [vmem:[#allocation4 + $0x38] sm:$0xff]  ;;  %v108_v13 = vmul.f32 0.5, %v92_v5  ;;  %v109_v14 = vmul.f32 0.5, %v93_v6  ;;  %v96_v17 = vld [vmem:[#allocation7] sm:$0xff] }
  0x29   :  { %358 = vtanh.f32 %v104_v7  ;;  %v110_v15 = vmul.f32 0.5, %v94_v10  ;;  %v111_v16 = vmul.f32 0.5, %v95_v12  ;;  %v97_v18 = vld [vmem:[#allocation7 + $0x8] sm:$0xff]  ;;  %v98_v20 = vld [vmem:[#allocation7 + $0x10] sm:$0xff]  ;;  %v99_v22 = vld [vmem:[#allocation7 + $0x18] sm:$0xff]  ;;  %v136_v25 = vsub.f32 1.0, %v96_v17 }
  0x2a   :  { %360 = vtanh.f32 %v105_v8  ;;  %v100_v23 = vld [vmem:[#allocation7 + $0x20] sm:$0xff]  ;;  %v101_v27 = vld [vmem:[#allocation7 + $0x28] sm:$0xff]  ;;  %v137_v29 = vsub.f32 1.0, %v97_v18  ;;  %v138_v33 = vsub.f32 1.0, %v98_v20  ;;  %v139_v37 = vsub.f32 1.0, %v99_v22  ;;  %v102_v50 = vld [vmem:[#allocation7 + $0x30] sm:$0xff] }
  0x2b   :  { %362 = vtanh.f32 %v106_v9  ;;  %v140_v38 = vsub.f32 1.0, %v100_v23  ;;  %v141_v42 = vsub.f32 1.0, %v101_v27  ;;  %v103_v59 = vld [vmem:[#allocation7 + $0x38] sm:$0xff]  ;;  %v142_v62 = vsub.f32 1.0, %v102_v50  ;;  %v176_v18 = vld [vmem:[#allocation9] sm:$0xff] }
  0x2c   :  { %364 = vtanh.f32 %v107_v11  ;;  %v143_v4 = vsub.f32 1.0, %v103_v59 }
  0x2d   :  { %366 = vtanh.f32 %v108_v13 }
  0x2e   :  { %368 = vtanh.f32 %v109_v14 }
  0x2f   :  { %370 = vtanh.f32 %v110_v15 }
  0x30   :  { %372 = vtanh.f32 %v111_v16 }
  0x36   :  { %v359_v19 = vpop.eup %358 }
  0x37   :  { %v361_v21 = vpop.eup %360  ;;  %v120_v24 = vmul.f32 0.5, %v359_v19 }
  0x38   :  { %v363_v26 = vpop.eup %362  ;;  %v121_v28 = vmul.f32 0.5, %v361_v21 }
  0x39   :  { %v365_v30 = vpop.eup %364  ;;  %v122_v31 = vmul.f32 0.5, %v363_v26  ;;  %v128_v32 = vsub.f32 0.5, %v120_v24  ;;  %v180_v24 = vld [vmem:[#allocation9 + $0x8] sm:$0xff] }
  0x3a   :  { %v367_v34 = vpop.eup %366  ;;  %v123_v35 = vmul.f32 0.5, %v365_v30  ;;  %v129_v36 = vsub.f32 0.5, %v121_v28 }
  0x3b   :  { %v369_v39 = vpop.eup %368  ;;  %v124_v40 = vmul.f32 0.5, %v367_v34  ;;  %v130_v41 = vsub.f32 0.5, %v122_v31  ;;  %v144_v43 = vmul.f32 %v136_v25, %v128_v32  ;;  %v160_v48 = vadd.f32 %v136_v25, %v128_v32 }
  0x3c   :  { %v371_v44 = vpop.eup %370  ;;  %v125_v45 = vmul.f32 0.5, %v369_v39  ;;  %v131_v46 = vsub.f32 0.5, %v123_v35  ;;  %v145_v47 = vmul.f32 %v137_v29, %v129_v36  ;;  %v161_v54 = vadd.f32 %v137_v29, %v129_v36 }
  0x3d   :  { %v373_v49 = vpop.eup %372  ;;  %v126_v51 = vmul.f32 0.5, %v371_v44  ;;  %v132_v52 = vsub.f32 0.5, %v124_v40  ;;  %v146_v53 = vmul.f32 %v138_v33, %v130_v41  ;;  %v162_v60 = vadd.f32 %v138_v33, %v130_v41 }
  0x3e   :  { %v127_v55 = vmul.f32 0.5, %v373_v49  ;;  %v133_v56 = vsub.f32 0.5, %v125_v45  ;;  %v147_v57 = vmul.f32 %v139_v37, %v131_v46  ;;  %v152_v58 = vadd.f32 %v145_v47, %v144_v43 }
  0x3f   :  { %v134_v61 = vsub.f32 0.5, %v126_v51  ;;  %v148_v63 = vmul.f32 %v140_v38, %v132_v52  ;;  %v163_v1 = vadd.f32 %v139_v37, %v131_v46  ;;  %v168_v2 = vadd.f32 %v161_v54, %v160_v48 }
  0x40   :  { %v153_v0 = vadd.f32 %v152_v58, %v146_v53  ;;  %v135_v3 = vsub.f32 0.5, %v127_v55  ;;  %v149_v5 = vmul.f32 %v141_v42, %v133_v56  ;;  %v164_v7 = vadd.f32 %v140_v38, %v132_v52 }
  0x41   :  { %v169_v8 = vadd.f32 %v168_v2, %v162_v60  ;;  %v150_v9 = vmul.f32 %v142_v62, %v134_v61  ;;  %v165_v11 = vadd.f32 %v141_v42, %v133_v56  ;;  %v166_v15 = vadd.f32 %v142_v62, %v134_v61 }
  0x42   :  { %v154_v6 = vadd.f32 %v153_v0, %v147_v57  ;;  %v151_v13 = vmul.f32 %v143_v4, %v135_v3  ;;  %v167_v19 = vadd.f32 %v143_v4, %v135_v3 }
  0x43   :  { %v170_v12 = vadd.f32 %v169_v8, %v163_v1 }
  0x44   :  { %v155_v10 = vadd.f32 %v154_v6, %v148_v63 }
  0x45   :  { %v171_v16 = vadd.f32 %v170_v12, %v164_v7 }
  0x46   :  { %v156_v14 = vadd.f32 %v155_v10, %v149_v5 }
  0x47   :  { %v172_v20 = vadd.f32 %v171_v16, %v165_v11 }
  0x48   :  { %v157_v17 = vadd.f32 %v156_v14, %v150_v9 }
  0x49   :  { %v173_v22 = vadd.f32 %v172_v20, %v166_v15 }
  0x4a   :  { %v158_v21 = vadd.f32 %v157_v17, %v151_v13 }
  0x4b   :  { %v174_v25 = vadd.f32 %v173_v22, %v167_v19 }
  0x4c   :  { %v177_v23 = vadd.f32 %v176_v18, %v158_v21 }
  0x4d   :  { %v181_v26 = vadd.f32 %v180_v24, %v174_v25 }
  0x4e   :  { %178 = vst [vmem:[#allocation9] sm:$0xff] %v177_v23 }
  0x4f   :  { %182 = vst [vmem:[#allocation9 + $0x8] sm:$0xff] %v181_v26 }
  0x50 PF:  { %p351_p11 = scmp.ge.s32.totalorder %s561_s0, 64 }
  0x52   :  { %186 = sbr.rel (%p351_p11) target bundleno = 133 (0x85), region = 29 }
  0x57   :  { %v187_v27 = vld [vmem:[#allocation4] sm:$0xff]  ;;  %v188_v28 = vld [vmem:[#allocation4 + $0x8] sm:$0xff]  ;;  %v189_v29 = vld [vmem:[#allocation4 + $0x10] sm:$0xff]  ;;  %v243_v41 = vlaneseq  ;;  %v509_v57 = vstv %s561_s0 }
  0x58   :  { %v190_v30 = vld [vmem:[#allocation4 + $0x18] sm:$0xff]  ;;  %v191_v31 = vld [vmem:[#allocation4 + $0x20] sm:$0xff]  ;;  %v192_v32 = vld [vmem:[#allocation4 + $0x28] sm:$0xff]  ;;  %v203_v33 = vmul.f32 0.5, %v187_v27  ;;  %v204_v34 = vmul.f32 0.5, %v188_v28  ;;  %v205_v35 = vmul.f32 0.5, %v189_v29 }
  0x59   :  { %v193_v36 = vld [vmem:[#allocation4 + $0x30] sm:$0xff]  ;;  %v206_v37 = vmul.f32 0.5, %v190_v30  ;;  %v194_v38 = vld [vmem:[#allocation4 + $0x38] sm:$0xff]  ;;  %v207_v39 = vmul.f32 0.5, %v191_v31  ;;  %v208_v40 = vmul.f32 0.5, %v192_v32  ;;  %v244_v44 = vshrl.u32 %v243_v41, 7 }
  0x5a   :  { %374 = vtanh.f32 %v203_v33  ;;  %v209_v42 = vmul.f32 0.5, %v193_v36  ;;  %v210_v43 = vmul.f32 0.5, %v194_v38  ;;  %v195_v45 = vld [vmem:[#allocation7] sm:$0xff]  ;;  %v196_v46 = vld [vmem:[#allocation7 + $0x8] sm:$0xff]  ;;  %v197_v47 = vld [vmem:[#allocation7 + $0x10] sm:$0xff] }
  0x5b   :  { %376 = vtanh.f32 %v204_v34  ;;  %v198_v48 = vld [vmem:[#allocation7 + $0x18] sm:$0xff]  ;;  %v199_v49 = vld [vmem:[#allocation7 + $0x20] sm:$0xff]  ;;  %v500_v50 = vld [vmem:[#allocation7 + $0x28] sm:$0xff]  ;;  %v245_v51 = vadd.s32 8, %v244_v44  ;;  %v235_v54 = vsub.f32 1.0, %v195_v45  ;;  %v246_v55 = vadd.s32 16, %v244_v44 }
  0x5c   :  { %378 = vtanh.f32 %v205_v35  ;;  %v502_v52 = vld [vmem:[#allocation7 + $0x30] sm:$0xff]  ;;  %v504_v53 = vld [vmem:[#allocation7 + $0x38] sm:$0xff]  ;;  %v247_v56 = vadd.s32 24, %v244_v44  ;;  %v236_v58 = vsub.f32 1.0, %v196_v46  ;;  %v248_v59 = vadd.s32 32, %v244_v44 }
  0x5d   :  { %380 = vtanh.f32 %v206_v37  ;;  %v249_v60 = vadd.s32 40, %v244_v44  ;;  %v511_v61 = vadd.s32 48, %v244_v44  ;;  %v237_v62 = vsub.f32 1.0, %v197_v47 }
  0x5e   :  { %382 = vtanh.f32 %v207_v39  ;;  %v238_v63 = vsub.f32 1.0, %v198_v48  ;;  %v239_v0 = vsub.f32 1.0, %v199_v49  ;;  %v240_v1 = vsub.f32 1.0, %v500_v50 }
  0x5f   :  { %384 = vtanh.f32 %v208_v40  ;;  %v241_v3 = vsub.f32 1.0, %v502_v52  ;;  %v242_v4 = vsub.f32 1.0, %v504_v53  ;;  %vm263_vm0 = vcmp.lt.s32.totalorder %v244_v44, %v509_v57 }
  0x60   :  { %386 = vtanh.f32 %v209_v42  ;;  %vm264_vm1 = vcmp.lt.s32.totalorder %v245_v51, %v509_v57  ;;  %v251_v7 = vadd.s32 56, %v244_v44  ;;  %vm265_vm2 = vcmp.lt.s32.totalorder %v246_v55, %v509_v57 }
  0x61   :  { %388 = vtanh.f32 %v210_v43  ;;  %vm266_vm3 = vcmp.lt.s32.totalorder %v247_v56, %v509_v57  ;;  %vm267_vm4 = vcmp.lt.s32.totalorder %v248_v59, %v509_v57  ;;  %vm268_vm5 = vcmp.lt.s32.totalorder %v249_v60, %v509_v57 }
  0x62   :  { %vm269_vm6 = vcmp.lt.s32.totalorder %v511_v61, %v509_v57  ;;  %v279_v13 = vsel %vm263_vm0, %v235_v54, 0.0  ;;  %v280_v14 = vsel %vm264_vm1, %v236_v58, 0.0  ;;  %v281_v18 = vsel %vm265_vm2, %v237_v62, 0.0 }
  0x63   :  { %v282_v19 = vsel %vm266_vm3, %v238_v63, 0.0  ;;  %v283_v24 = vsel %vm267_vm4, %v239_v0, 0.0  ;;  %v284_v45 = vsel %vm268_vm5, %v240_v1, 0.0  ;;  %vm270_vm7 = vcmp.lt.s32.totalorder %v251_v7, %v509_v57 }
  0x64   :  { %v285_v51 = vsel %vm269_vm6, %v241_v3, 0.0  ;;  %v286_v56 = vsel %vm270_vm7, %v242_v4, 0.0  ;;  %v323_v4 = vld [vmem:[#allocation9 + $0x8] sm:$0xff] }
  0x67   :  { %v375_v2 = vpop.eup %374 }
  0x68   :  { %v377_v5 = vpop.eup %376  ;;  %v219_v6 = vmul.f32 0.5, %v375_v2 }
  0x69   :  { %v379_v8 = vpop.eup %378  ;;  %v220_v9 = vmul.f32 0.5, %v377_v5 }
  0x6a   :  { %v381_v10 = vpop.eup %380  ;;  %v221_v11 = vmul.f32 0.5, %v379_v8  ;;  %v227_v12 = vsub.f32 0.5, %v219_v6  ;;  %v319_v8 = vld [vmem:[#allocation9] sm:$0xff] }
  0x6b   :  { %v383_v15 = vpop.eup %382  ;;  %v222_v16 = vmul.f32 0.5, %v381_v10  ;;  %v228_v17 = vsub.f32 0.5, %v220_v9 }
  0x6c   :  { %v385_v20 = vpop.eup %384  ;;  %v223_v21 = vmul.f32 0.5, %v383_v15  ;;  %v229_v22 = vsub.f32 0.5, %v221_v11  ;;  %v271_v23 = vsel %vm263_vm0, %v227_v12, 0.0 }
  0x6d   :  { %v387_v25 = vpop.eup %386  ;;  %v224_v26 = vmul.f32 0.5, %v385_v20  ;;  %v230_v27 = vsub.f32 0.5, %v222_v16  ;;  %v272_v28 = vsel %vm264_vm1, %v228_v17, 0.0  ;;  %v287_v29 = vmul.f32 %v279_v13, %v271_v23 }
  0x6e   :  { %v389_v30 = vpop.eup %388  ;;  %v225_v31 = vmul.f32 0.5, %v387_v25  ;;  %v231_v32 = vsub.f32 0.5, %v223_v21  ;;  %v273_v33 = vsel %vm265_vm2, %v229_v22, 0.0  ;;  %v288_v34 = vmul.f32 %v280_v14, %v272_v28 }
  0x6f   :  { %v226_v35 = vmul.f32 0.5, %v389_v30  ;;  %v232_v36 = vsub.f32 0.5, %v224_v26  ;;  %v274_v37 = vsel %vm266_vm3, %v230_v27, 0.0  ;;  %v289_v38 = vmul.f32 %v281_v18, %v273_v33 }
  0x70   :  { %v233_v39 = vsub.f32 0.5, %v225_v31  ;;  %v275_v40 = vsel %vm267_vm4, %v231_v32, 0.0  ;;  %v290_v41 = vmul.f32 %v282_v19, %v274_v37  ;;  %v295_v42 = vadd.f32 %v288_v34, %v287_v29 }
  0x71   :  { %v234_v43 = vsub.f32 0.5, %v226_v35  ;;  %v276_v44 = vsel %vm268_vm5, %v232_v36, 0.0  ;;  %v303_v46 = vadd.f32 %v279_v13, %v271_v23  ;;  %v291_v47 = vmul.f32 %v283_v24, %v275_v40 }
  0x72   :  { %v296_v48 = vadd.f32 %v295_v42, %v289_v38  ;;  %v304_v49 = vadd.f32 %v280_v14, %v272_v28  ;;  %v277_v50 = vsel %vm269_vm6, %v233_v39, 0.0  ;;  %v305_v52 = vadd.f32 %v281_v18, %v273_v33 }
  0x73   :  { %v292_v53 = vmul.f32 %v284_v45, %v276_v44  ;;  %v278_v55 = vsel %vm270_vm7, %v234_v43, 0.0  ;;  %v306_v58 = vadd.f32 %v282_v19, %v274_v37  ;;  %v293_v60 = vmul.f32 %v285_v51, %v277_v50 }
  0x74   :  { %v297_v54 = vadd.f32 %v296_v48, %v290_v41  ;;  %v311_v59 = vadd.f32 %v304_v49, %v303_v46  ;;  %v307_v63 = vadd.f32 %v283_v24, %v275_v40  ;;  %v294_v1 = vmul.f32 %v286_v56, %v278_v55 }
  0x75   :  { %v308_v5 = vadd.f32 %v284_v45, %v276_v44  ;;  %v309_v9 = vadd.f32 %v285_v51, %v277_v50  ;;  %v310_v3 = vadd.f32 %v286_v56, %v278_v55 }
  0x76   :  { %v298_v62 = vadd.f32 %v297_v54, %v291_v47  ;;  %v312_v0 = vadd.f32 %v311_v59, %v305_v52 }
  0x78   :  { %v299_v2 = vadd.f32 %v298_v62, %v292_v53  ;;  %v313_v6 = vadd.f32 %v312_v0, %v306_v58 }
  0x7a   :  { %v300_v7 = vadd.f32 %v299_v2, %v293_v60  ;;  %v314_v57 = vadd.f32 %v313_v6, %v307_v63 }
  0x7c   :  { %v301_v61 = vadd.f32 %v300_v7, %v294_v1  ;;  %v315_v10 = vadd.f32 %v314_v57, %v308_v5 }
  0x7e   :  { %v320_v11 = vadd.f32 %v319_v8, %v301_v61  ;;  %v316_v12 = vadd.f32 %v315_v10, %v309_v9 }
  0x80   :  { %321 = vst [vmem:[#allocation9] sm:$0xff] %v320_v11  ;;  %v317_v13 = vadd.f32 %v316_v12, %v310_v3 }
  0x82   :  { %v324_v14 = vadd.f32 %v323_v4, %v317_v13 }
  0x84   :  { %325 = vst [vmem:[#allocation9 + $0x8] sm:$0xff] %v324_v14 }
  0x85 PF:  { %s461_s0 = smov [#allocation9]  }
  0x86   :  { %s331_s30 = sshll.u32 %s461_s0, 4  ;;  %s332_s30 = int_to_ptr.vmem [resolvable:$true] %s331_s30 }
  0x87   :  { %s430_s4 = scalar_lea.vmem %s332_s30, 256  ;;  %p435_p13 = scmp.lt.s32.totalorder %s332_s30, %s332_s30 }
  0x88   :  { %p431_p12 = scmp.ne.s32.totalorder %s332_s30, %s430_s4  ;;  %p436_p0 = scmp.lt.s32.totalorder %s430_s4, %s430_s4 }
  0x8a   :  { %p437_p1 = por %p436_p0, %p435_p13 }
  0x8c   :  { %p438_p2 = pnand %p437_p1, %p431_p12 }
  0x8e   :  { %441 = shalt.err (!%p438_p2)
}
  0x8f   :  { %337 = dma.vmem_to_hbm [thread:$0]  %s332_s30, 256, %s564_s3, [#allocation6], %s457_s16, %s457_s16, %s458_s17  }
  0x90   :  { %454 = dma.done.wait [#allocation6], 256  }
  0x91   :  { %455 = vsyncadd [#allocation6], 4294967040 }
  0x92   :  { %341 = vsyncpa [#allocation5], 1 }
  0x93   :  { %342 = vsyncpa [#allocation8], 1 }
  0x94   :  { %343 = vsyncpa [#allocation6], 1 }

</bundles_post_ra>
